<compile_context>
chip_gen: v7x
topology: tpu7x:2x2x1
jax: 0.10.0
libtpu: 0.0.40
codegen_flags: <defaults>
</compile_context>

<pallas_src>
import jax
import jax.numpy as jnp
from jax.experimental import pallas as pl
from jax.experimental.pallas import tpu as pltpu


def basic_block_kernel(x_ref, w1_ref, w2_ref, s1_ref, b1_ref, s2_ref, b2_ref,
                       out_ref, xpad_ref, mid_ref):
    # x_ref:    (B, H, W*C)     bf16  lane-dense input block (B images / step)
    # w1_ref:   (3, W*C, W*C)   bf16  conv1 banded weights (one band per dy)
    # w2_ref:   (3, W*C, W*C)   bf16  conv2 banded weights
    # s1/b1:    (1, W*C)        f32   folded BN1 scale / bias (tiled over W)
    # s2/b2:    (1, W*C)        f32   folded BN2 scale / bias (tiled over W)
    # out_ref:  (B, H, W*C)     f32   lane-dense output block
    # xpad_ref: (B*(H+2), W*C)  bf16  scratch: row-padded input slab
    # mid_ref:  (B*(H+2), W*C)  bf16  scratch: row-padded conv1-output slab
    B, H, WC = x_ref.shape
    R = xpad_ref.shape[0]            # B * (H + 2)
    M = R - 2                        # matmul M (includes B-1 discarded seam rows)

    zrow1 = jnp.zeros((1, WC), xpad_ref.dtype)
    zrow2 = jnp.zeros((2, WC), xpad_ref.dtype)

    def zero_halo(ref):
        # Only per-image top/bottom halo rows need zeroing: a few full-lane
        # row stores, executed every step (correct when the "parallel" batch
        # axis is sharded across TensorCores: each core has its own scratch).
        ref[0:1, :] = zrow1
        ref[R - 1:R, :] = zrow1
        for b in range(B - 1):
            s = b * (H + 2) + H + 1
            ref[s:s + 2, :] = zrow2          # adjacent halo rows of images b, b+1

    def conv3x3(src_ref, w_ref):
        # dy taps = sublane row shifts of the padded slab; dx taps and the
        # left/right zero padding are folded into the block-tridiagonal weight
        # band, so every dot is a dense (M, 128) x (128, 128) MXU matmul with
        # f32 accumulation and a lane-dense result.
        acc = jnp.dot(src_ref[0:M, :], w_ref[0],
                      preferred_element_type=jnp.float32)
        acc = acc + jnp.dot(src_ref[1:M + 1, :], w_ref[1],
                            preferred_element_type=jnp.float32)
        acc = acc + jnp.dot(src_ref[2:M + 2, :], w_ref[2],
                            preferred_element_type=jnp.float32)
        return acc                                            # (M, W*C) f32

    # ---- pack input into the row-padded slab (aligned full-lane stores) ----
    zero_halo(xpad_ref)
    for b in range(B):
        r0 = b * (H + 2) + 1
        xpad_ref[r0:r0 + H, :] = x_ref[b]

    # ---- conv1 -> BN1 -> ReLU ----
    acc1 = conv3x3(xpad_ref, w1_ref)
    out1 = jnp.maximum(acc1 * s1_ref[...] + b1_ref[...], 0.0)
    mid_ref[1:1 + M, :] = out1.astype(mid_ref.dtype)   # one bulk lane-dense store
    zero_halo(mid_ref)                                 # overwrite seam rows with zeros

    # ---- conv2 -> BN2 -> residual add -> ReLU ----
    acc2 = conv3x3(mid_ref, w2_ref)
    out2 = acc2 * s2_ref[...] + b2_ref[...]
    for b in range(B):
        r0 = b * (H + 2)
        # Residual uses the bf16 activations (same precision as the matmul
        # operands); the add / ReLU / store stay in f32.
        res = x_ref[b].astype(jnp.float32)
        out_ref[b] = jnp.maximum(out2[r0:r0 + H, :] + res, 0.0)


def _band_conv_weights(w_pt, W):
    """(O, I, 3, 3) PyTorch conv weight -> (3, W*I, W*O) block-tridiagonal bands.

    band[dy, w_in*I + ci, w_out*O + co] = w_pt[co, ci, dy, w_in - w_out + 1]
    when |w_in - w_out| <= 1, else 0.  This folds the dx taps and the
    left/right "SAME" zero padding of the conv into the matmul weights.
    """
    O, I = int(w_pt.shape[0]), int(w_pt.shape[1])
    wt = jnp.transpose(w_pt, (2, 3, 1, 0))               # (dy, dx, ci, co)
    w_in = jnp.arange(W)[:, None]
    w_out = jnp.arange(W)[None, :]
    dx = w_in - w_out + 1                                 # (W, W)
    valid = ((dx >= 0) & (dx <= 2)).astype(wt.dtype)
    band = wt[:, jnp.clip(dx, 0, 2)]                      # (3, W, W, I, O)
    band = band * valid[None, :, :, None, None]
    band = jnp.transpose(band, (0, 1, 3, 2, 4))           # (3, w_in, ci, w_out, co)
    return band.reshape(3, W * I, W * O).astype(jnp.bfloat16)


def basic_block_forward(x_nchw, params, eps=1e-5, b_tile=2):
    """BasicBlock forward (stride=(1,1), downsample=None). Input/output NCHW."""
    N, C, H, W = x_nchw.shape
    cout, cin = params["conv1_w"].shape[0], params["conv1_w"].shape[1]
    assert cin == C and cout == C, (
        "BasicBlock with no downsample requires inplanes == planes")
    if N % b_tile != 0:
        b_tile = 1
    WC = W * C
    # Lane-density note: full-width (unmasked) vector stores require W*C to be
    # a multiple of 128 (true for the 16x16x8 test); other sizes are still
    # correct, just with partially masked stores.

    # NHWC, lane-dense (N, H, W*C), bf16 matmul operands.
    x_dense = (jnp.transpose(x_nchw, (0, 2, 3, 1))
               .reshape(N, H, WC).astype(jnp.bfloat16))

    # Banded conv weights: dx taps + W-boundary padding folded into the band.
    w1b = _band_conv_weights(params["conv1_w"], W)
    w2b = _band_conv_weights(params["conv2_w"], W)

    # Fold eval-mode BatchNorm into per-channel scale/bias, tiled to lane-dense
    # (1, W*C) vectors (f32).
    s1 = params["bn1_gamma"] / jnp.sqrt(params["bn1_var"] + eps)
    b1 = params["bn1_beta"] - params["bn1_mean"] * s1
    s2 = params["bn2_gamma"] / jnp.sqrt(params["bn2_var"] + eps)
    b2 = params["bn2_beta"] - params["bn2_mean"] * s2
    s1d = jnp.tile(s1.reshape(1, C), (1, W)).astype(jnp.float32)
    b1d = jnp.tile(b1.reshape(1, C), (1, W)).astype(jnp.float32)
    s2d = jnp.tile(s2.reshape(1, C), (1, W)).astype(jnp.float32)
    b2d = jnp.tile(b2.reshape(1, C), (1, W)).astype(jnp.float32)

    R = b_tile * (H + 2)

    # Footprint-derived VMEM limit (x2 for double-buffering) + headroom.
    scratch_bytes = 2 * R * WC * 2                       # xpad + mid (bf16)
    weight_bytes = 2 * 3 * WC * WC * 2                   # both banded convs (bf16)
    io_bytes = b_tile * H * WC * (2 + 4)                 # x block (bf16) + out block (f32)
    bn_bytes = 4 * WC * 4
    vmem_limit = int(2 * (scratch_bytes + weight_bytes + io_bytes + bn_bytes)
                     + (4 << 20))

    cost = pl.CostEstimate(
        flops=2 * 2 * N * H * W * 9 * C * C,             # two 3x3 convs
        transcendentals=0,
        bytes_accessed=(N * H * WC * (2 + 4)             # input + output
                        + 2 * 3 * WC * WC * 2            # banded weights
                        + 4 * WC * 4),                   # BN vectors
    )

    out_dense = pl.pallas_call(
        basic_block_kernel,
        out_shape=jax.ShapeDtypeStruct((N, H, WC), jnp.float32),
        grid_spec=pltpu.PrefetchScalarGridSpec(
            num_scalar_prefetch=0,
            grid=(N // b_tile,),     # "parallel" -> sharded over v7x's 2 TCs
            in_specs=[
                pl.BlockSpec((b_tile, H, WC), lambda n: (n, 0, 0)),
                pl.BlockSpec((3, WC, WC), lambda n: (0, 0, 0)),
                pl.BlockSpec((3, WC, WC), lambda n: (0, 0, 0)),
                pl.BlockSpec((1, WC), lambda n: (0, 0)),
                pl.BlockSpec((1, WC), lambda n: (0, 0)),
                pl.BlockSpec((1, WC), lambda n: (0, 0)),
                pl.BlockSpec((1, WC), lambda n: (0, 0)),
            ],
            out_specs=pl.BlockSpec((b_tile, H, WC), lambda n: (n, 0, 0)),
            scratch_shapes=[
                pltpu.VMEM((R, WC), jnp.bfloat16),   # row-padded input slab
                pltpu.VMEM((R, WC), jnp.bfloat16),   # row-padded conv1-output slab
            ],
        ),
        compiler_params=pltpu.CompilerParams(
            dimension_semantics=("parallel",),
            vmem_limit_bytes=vmem_limit),
        cost_estimate=cost,
    )(x_dense, w1b, w2b, s1d, b1d, s2d, b2d)

    out = out_dense.reshape(N, H, W, C)
    return jnp.transpose(out, (0, 3, 1, 2))   # back to NCHW


def reference_forward(x_nchw, params, eps=1e-5):
    """Plain-JAX f32 reference (eval-mode BN) for correctness checking."""
    x = jnp.transpose(x_nchw, (0, 2, 3, 1)).astype(jnp.float32)

    def conv3x3(x, w_pt):
        w = jnp.transpose(w_pt, (2, 3, 1, 0))
        return jax.lax.conv_general_dilated(
            x, w, (1, 1), "SAME",
            dimension_numbers=("NHWC", "HWIO", "NHWC"))

    def bn(x, g, b, m, v):
        return (x - m) / jnp.sqrt(v + eps) * g + b

    out = conv3x3(x, params["conv1_w"])
    out = bn(out, params["bn1_gamma"], params["bn1_beta"],
             params["bn1_mean"], params["bn1_var"])
    out = jnp.maximum(out, 0.0)
    out = conv3x3(out, params["conv2_w"])
    out = bn(out, params["bn2_gamma"], params["bn2_beta"],
             params["bn2_mean"], params["bn2_var"])
    out = jnp.maximum(out + x, 0.0)
    return jnp.transpose(out, (0, 3, 1, 2))


def init_params(key, inplanes, planes):
    ks = jax.random.split(key, 6)
    return {
        "conv1_w": 0.1 * jax.random.normal(ks[0], (planes, inplanes, 3, 3), jnp.float32),
        "conv2_w": 0.1 * jax.random.normal(ks[1], (planes, planes, 3, 3), jnp.float32),
        "bn1_gamma": 1.0 + 0.1 * jax.random.normal(ks[2], (planes,), jnp.float32),
        "bn1_beta": 0.1 * jax.random.normal(ks[3], (planes,), jnp.float32),
        "bn1_mean": jnp.zeros((planes,), jnp.float32),
        "bn1_var": jnp.ones((planes,), jnp.float32),
        "bn2_gamma": 1.0 + 0.1 * jax.random.normal(ks[4], (planes,), jnp.float32),
        "bn2_beta": 0.1 * jax.random.normal(ks[5], (planes,), jnp.float32),
        "bn2_mean": jnp.zeros((planes,), jnp.float32),
        "bn2_var": jnp.ones((planes,), jnp.float32),
    }


if __name__ == "__main__":
    key = jax.random.PRNGKey(0)
    kx, kp = jax.random.split(key)

    # inplanes == planes == 8, stride=(1,1), no downsample; W*C = 128 lanes.
    # N=12 with B_TILE=2 -> grid of 6 steps -> >=3 pipelined steps per v7x TC.
    N, C, H, W = 12, 8, 16, 16
    x = jax.random.normal(kx, (N, C, H, W), jnp.float32)
    params = init_params(kp, inplanes=C, planes=C)

    out = jax.block_until_ready(basic_block_forward(x, params))
    ref = reference_forward(x, params)

    assert out.shape == (N, C, H, W)
    # bf16 matmul operands / bf16 residual source (f32 accumulation) vs.
    # pure-f32 reference -> loosened tolerance.
    assert jnp.allclose(out, ref, atol=5e-2, rtol=5e-2), "mismatch vs reference"

    print("KERNEL_OK")
</pallas_src>

<mosaic_0001>
module attributes {stable_mosaic.version = 11 : i64} {
  func.func @basic_block_kernel(%arg0: i32, %arg1: memref<2x16x128xbf16, #tpu.memory_space<vmem>>, %arg2: memref<3x128x128xbf16, #tpu.memory_space<vmem>>, %arg3: memref<3x128x128xbf16, #tpu.memory_space<vmem>>, %arg4: memref<1x128xf32, #tpu.memory_space<vmem>>, %arg5: memref<1x128xf32, #tpu.memory_space<vmem>>, %arg6: memref<1x128xf32, #tpu.memory_space<vmem>>, %arg7: memref<1x128xf32, #tpu.memory_space<vmem>>, %arg8: memref<2x16x128xf32, #tpu.memory_space<vmem>>, %arg9: memref<36x128xbf16, #tpu.memory_space<vmem>>, %arg10: memref<36x128xbf16, #tpu.memory_space<vmem>>) attributes {dimension_semantics = [#tpu.dimension_semantics<parallel>], iteration_bounds = array<i64: 6>, scalar_prefetch = 0 : i64, scratch_operands = 2 : i64, tpu.core_type = #tpu.core_type<tc>, window_params = [{transform_indices = @transform_0, window_bounds = array<i64: 2, 16, 128>}, {pipeline_mode = #tpu.pipeline_mode<synchronous>, transform_indices = @transform_1, window_bounds = array<i64: 3, 128, 128>}, {pipeline_mode = #tpu.pipeline_mode<synchronous>, transform_indices = @transform_2, window_bounds = array<i64: 3, 128, 128>}, {pipeline_mode = #tpu.pipeline_mode<synchronous>, transform_indices = @transform_3, window_bounds = array<i64: 1, 128>}, {pipeline_mode = #tpu.pipeline_mode<synchronous>, transform_indices = @transform_4, window_bounds = array<i64: 1, 128>}, {pipeline_mode = #tpu.pipeline_mode<synchronous>, transform_indices = @transform_5, window_bounds = array<i64: 1, 128>}, {pipeline_mode = #tpu.pipeline_mode<synchronous>, transform_indices = @transform_6, window_bounds = array<i64: 1, 128>}, {transform_indices = @transform_7, window_bounds = array<i64: 2, 16, 128>}]} {
    %cst = arith.constant 0.000000e+00 : bf16
    %0 = vector.broadcast %cst : bf16 to vector<1x128xbf16>
    %cst_0 = arith.constant 0.000000e+00 : bf16
    %1 = vector.broadcast %cst_0 : bf16 to vector<2x128xbf16>
    %c0 = arith.constant 0 : index
    %c0_1 = arith.constant 0 : index
    %2 = vector.load %arg9[%c0, %c0_1] : memref<36x128xbf16, #tpu.memory_space<vmem>>, vector<1x128xbf16>
    tpu.vector_store %arg9[%c0, %c0_1], %0 {strides = array<i32>} : memref<36x128xbf16, #tpu.memory_space<vmem>>, vector<1x128xbf16>,
    %c35 = arith.constant 35 : index
    %c0_2 = arith.constant 0 : index
    %3 = vector.load %arg9[%c35, %c0_2] : memref<36x128xbf16, #tpu.memory_space<vmem>>, vector<1x128xbf16>
    tpu.vector_store %arg9[%c35, %c0_2], %0 {strides = array<i32>} : memref<36x128xbf16, #tpu.memory_space<vmem>>, vector<1x128xbf16>,
    %c17 = arith.constant 17 : index
    %c0_3 = arith.constant 0 : index
    %4 = vector.load %arg9[%c17, %c0_3] : memref<36x128xbf16, #tpu.memory_space<vmem>>, vector<2x128xbf16>
    tpu.vector_store %arg9[%c17, %c0_3], %1 {strides = array<i32>} : memref<36x128xbf16, #tpu.memory_space<vmem>>, vector<2x128xbf16>,
    %c0_4 = arith.constant 0 : index
    %c0_5 = arith.constant 0 : index
    %c0_6 = arith.constant 0 : index
    %5 = vector.load %arg1[%c0_4, %c0_5, %c0_6] : memref<2x16x128xbf16, #tpu.memory_space<vmem>>, vector<1x16x128xbf16>
    %6 = vector.shape_cast %5 : vector<1x16x128xbf16> to vector<16x128xbf16>
    %c1 = arith.constant 1 : index
    %c0_7 = arith.constant 0 : index
    %7 = vector.load %arg9[%c1, %c0_7] : memref<36x128xbf16, #tpu.memory_space<vmem>>, vector<16x128xbf16>
    tpu.vector_store %arg9[%c1, %c0_7], %6 {strides = array<i32>} : memref<36x128xbf16, #tpu.memory_space<vmem>>, vector<16x128xbf16>,
    %c1_8 = arith.constant 1 : index
    %c0_9 = arith.constant 0 : index
    %c0_10 = arith.constant 0 : index
    %8 = vector.load %arg1[%c1_8, %c0_9, %c0_10] : memref<2x16x128xbf16, #tpu.memory_space<vmem>>, vector<1x16x128xbf16>
    %9 = vector.shape_cast %8 : vector<1x16x128xbf16> to vector<16x128xbf16>
    %c19 = arith.constant 19 : index
    %c0_11 = arith.constant 0 : index
    %10 = vector.load %arg9[%c19, %c0_11] : memref<36x128xbf16, #tpu.memory_space<vmem>>, vector<16x128xbf16>
    tpu.vector_store %arg9[%c19, %c0_11], %9 {strides = array<i32>} : memref<36x128xbf16, #tpu.memory_space<vmem>>, vector<16x128xbf16>,
    %c0_12 = arith.constant 0 : index
    %c0_13 = arith.constant 0 : index
    %11 = vector.load %arg9[%c0_12, %c0_13] : memref<36x128xbf16, #tpu.memory_space<vmem>>, vector<34x128xbf16>
    %c0_14 = arith.constant 0 : index
    %c0_15 = arith.constant 0 : index
    %c0_16 = arith.constant 0 : index
    %12 = vector.load %arg2[%c0_14, %c0_15, %c0_16] : memref<3x128x128xbf16, #tpu.memory_space<vmem>>, vector<1x128x128xbf16>
    %13 = vector.shape_cast %12 : vector<1x128x128xbf16> to vector<128x128xbf16>
    %cst_17 = arith.constant dense<0.000000e+00> : vector<34x128xf32>
    %14 = tpu.matmul %11, %13, %cst_17 {dimension_numbers = #tpu.dot_dimension_numbers<[1], [0], [0], [1], [0, 0, 1, 1], [], []>} : vector<34x128xbf16>, vector<128x128xbf16>, vector<34x128xf32> -> vector<34x128xf32>
    %c1_18 = arith.constant 1 : index
    %c0_19 = arith.constant 0 : index
    %15 = vector.load %arg9[%c1_18, %c0_19] : memref<36x128xbf16, #tpu.memory_space<vmem>>, vector<34x128xbf16>
    %c1_20 = arith.constant 1 : index
    %c0_21 = arith.constant 0 : index
    %c0_22 = arith.constant 0 : index
    %16 = vector.load %arg2[%c1_20, %c0_21, %c0_22] : memref<3x128x128xbf16, #tpu.memory_space<vmem>>, vector<1x128x128xbf16>
    %17 = vector.shape_cast %16 : vector<1x128x128xbf16> to vector<128x128xbf16>
    %cst_23 = arith.constant dense<0.000000e+00> : vector<34x128xf32>
    %18 = tpu.matmul %15, %17, %cst_23 {dimension_numbers = #tpu.dot_dimension_numbers<[1], [0], [0], [1], [0, 0, 1, 1], [], []>} : vector<34x128xbf16>, vector<128x128xbf16>, vector<34x128xf32> -> vector<34x128xf32>
    %19 = arith.addf %14, %18 : vector<34x128xf32>
    %c2 = arith.constant 2 : index
    %c0_24 = arith.constant 0 : index
    %20 = vector.load %arg9[%c2, %c0_24] : memref<36x128xbf16, #tpu.memory_space<vmem>>, vector<34x128xbf16>
    %c2_25 = arith.constant 2 : index
    %c0_26 = arith.constant 0 : index
    %c0_27 = arith.constant 0 : index
    %21 = vector.load %arg2[%c2_25, %c0_26, %c0_27] : memref<3x128x128xbf16, #tpu.memory_space<vmem>>, vector<1x128x128xbf16>
    %22 = vector.shape_cast %21 : vector<1x128x128xbf16> to vector<128x128xbf16>
    %cst_28 = arith.constant dense<0.000000e+00> : vector<34x128xf32>
    %23 = tpu.matmul %20, %22, %cst_28 {dimension_numbers = #tpu.dot_dimension_numbers<[1], [0], [0], [1], [0, 0, 1, 1], [], []>} : vector<34x128xbf16>, vector<128x128xbf16>, vector<34x128xf32> -> vector<34x128xf32>
    %24 = arith.addf %19, %23 : vector<34x128xf32>
    %c0_29 = arith.constant 0 : index
    %c0_30 = arith.constant 0 : index
    %25 = vector.load %arg4[%c0_29, %c0_30] : memref<1x128xf32, #tpu.memory_space<vmem>>, vector<1x128xf32>
    %26 = vector.broadcast %25 : vector<1x128xf32> to vector<34x128xf32>
    %27 = arith.mulf %24, %26 : vector<34x128xf32>
    %c0_31 = arith.constant 0 : index
    %c0_32 = arith.constant 0 : index
    %28 = vector.load %arg5[%c0_31, %c0_32] : memref<1x128xf32, #tpu.memory_space<vmem>>, vector<1x128xf32>
    %29 = vector.broadcast %28 : vector<1x128xf32> to vector<34x128xf32>
    %30 = arith.addf %27, %29 : vector<34x128xf32>
    %cst_33 = arith.constant 0.000000e+00 : f32
    %31 = vector.broadcast %cst_33 : f32 to vector<34x128xf32>
    %32 = arith.maximumf %30, %31 : vector<34x128xf32>
    %33 = arith.truncf %32 : vector<34x128xf32> to vector<34x128xbf16>
    %c1_34 = arith.constant 1 : index
    %c0_35 = arith.constant 0 : index
    %34 = vector.load %arg10[%c1_34, %c0_35] : memref<36x128xbf16, #tpu.memory_space<vmem>>, vector<34x128xbf16>
    tpu.vector_store %arg10[%c1_34, %c0_35], %33 {strides = array<i32>} : memref<36x128xbf16, #tpu.memory_space<vmem>>, vector<34x128xbf16>,
    %c0_36 = arith.constant 0 : index
    %c0_37 = arith.constant 0 : index
    %35 = vector.load %arg10[%c0_36, %c0_37] : memref<36x128xbf16, #tpu.memory_space<vmem>>, vector<1x128xbf16>
    tpu.vector_store %arg10[%c0_36, %c0_37], %0 {strides = array<i32>} : memref<36x128xbf16, #tpu.memory_space<vmem>>, vector<1x128xbf16>,
    %c35_38 = arith.constant 35 : index
    %c0_39 = arith.constant 0 : index
    %36 = vector.load %arg10[%c35_38, %c0_39] : memref<36x128xbf16, #tpu.memory_space<vmem>>, vector<1x128xbf16>
    tpu.vector_store %arg10[%c35_38, %c0_39], %0 {strides = array<i32>} : memref<36x128xbf16, #tpu.memory_space<vmem>>, vector<1x128xbf16>,
    %c17_40 = arith.constant 17 : index
    %c0_41 = arith.constant 0 : index
    %37 = vector.load %arg10[%c17_40, %c0_41] : memref<36x128xbf16, #tpu.memory_space<vmem>>, vector<2x128xbf16>
    tpu.vector_store %arg10[%c17_40, %c0_41], %1 {strides = array<i32>} : memref<36x128xbf16, #tpu.memory_space<vmem>>, vector<2x128xbf16>,
    %c0_42 = arith.constant 0 : index
    %c0_43 = arith.constant 0 : index
    %38 = vector.load %arg10[%c0_42, %c0_43] : memref<36x128xbf16, #tpu.memory_space<vmem>>, vector<34x128xbf16>
    %c0_44 = arith.constant 0 : index
    %c0_45 = arith.constant 0 : index
    %c0_46 = arith.constant 0 : index
    %39 = vector.load %arg3[%c0_44, %c0_45, %c0_46] : memref<3x128x128xbf16, #tpu.memory_space<vmem>>, vector<1x128x128xbf16>
    %40 = vector.shape_cast %39 : vector<1x128x128xbf16> to vector<128x128xbf16>
    %cst_47 = arith.constant dense<0.000000e+00> : vector<34x128xf32>
    %41 = tpu.matmul %38, %40, %cst_47 {dimension_numbers = #tpu.dot_dimension_numbers<[1], [0], [0], [1], [0, 0, 1, 1], [], []>} : vector<34x128xbf16>, vector<128x128xbf16>, vector<34x128xf32> -> vector<34x128xf32>
    %c1_48 = arith.constant 1 : index
    %c0_49 = arith.constant 0 : index
    %42 = vector.load %arg10[%c1_48, %c0_49] : memref<36x128xbf16, #tpu.memory_space<vmem>>, vector<34x128xbf16>
    %c1_50 = arith.constant 1 : index
    %c0_51 = arith.constant 0 : index
    %c0_52 = arith.constant 0 : index
    %43 = vector.load %arg3[%c1_50, %c0_51, %c0_52] : memref<3x128x128xbf16, #tpu.memory_space<vmem>>, vector<1x128x128xbf16>
    %44 = vector.shape_cast %43 : vector<1x128x128xbf16> to vector<128x128xbf16>
    %cst_53 = arith.constant dense<0.000000e+00> : vector<34x128xf32>
    %45 = tpu.matmul %42, %44, %cst_53 {dimension_numbers = #tpu.dot_dimension_numbers<[1], [0], [0], [1], [0, 0, 1, 1], [], []>} : vector<34x128xbf16>, vector<128x128xbf16>, vector<34x128xf32> -> vector<34x128xf32>
    %46 = arith.addf %41, %45 : vector<34x128xf32>
    %c2_54 = arith.constant 2 : index
    %c0_55 = arith.constant 0 : index
    %47 = vector.load %arg10[%c2_54, %c0_55] : memref<36x128xbf16, #tpu.memory_space<vmem>>, vector<34x128xbf16>
    %c2_56 = arith.constant 2 : index
    %c0_57 = arith.constant 0 : index
    %c0_58 = arith.constant 0 : index
    %48 = vector.load %arg3[%c2_56, %c0_57, %c0_58] : memref<3x128x128xbf16, #tpu.memory_space<vmem>>, vector<1x128x128xbf16>
    %49 = vector.shape_cast %48 : vector<1x128x128xbf16> to vector<128x128xbf16>
    %cst_59 = arith.constant dense<0.000000e+00> : vector<34x128xf32>
    %50 = tpu.matmul %47, %49, %cst_59 {dimension_numbers = #tpu.dot_dimension_numbers<[1], [0], [0], [1], [0, 0, 1, 1], [], []>} : vector<34x128xbf16>, vector<128x128xbf16>, vector<34x128xf32> -> vector<34x128xf32>
    %51 = arith.addf %46, %50 : vector<34x128xf32>
    %c0_60 = arith.constant 0 : index
    %c0_61 = arith.constant 0 : index
    %52 = vector.load %arg6[%c0_60, %c0_61] : memref<1x128xf32, #tpu.memory_space<vmem>>, vector<1x128xf32>
    %53 = vector.broadcast %52 : vector<1x128xf32> to vector<34x128xf32>
    %54 = arith.mulf %51, %53 : vector<34x128xf32>
    %c0_62 = arith.constant 0 : index
    %c0_63 = arith.constant 0 : index
    %55 = vector.load %arg7[%c0_62, %c0_63] : memref<1x128xf32, #tpu.memory_space<vmem>>, vector<1x128xf32>
    %56 = vector.broadcast %55 : vector<1x128xf32> to vector<34x128xf32>
    %57 = arith.addf %54, %56 : vector<34x128xf32>
    %c0_64 = arith.constant 0 : index
    %c0_65 = arith.constant 0 : index
    %c0_66 = arith.constant 0 : index
    %58 = vector.load %arg1[%c0_64, %c0_65, %c0_66] : memref<2x16x128xbf16, #tpu.memory_space<vmem>>, vector<1x16x128xbf16>
    %59 = vector.shape_cast %58 : vector<1x16x128xbf16> to vector<16x128xbf16>
    %60 = arith.extf %59 : vector<16x128xbf16> to vector<16x128xf32>
    %61 = vector.extract_strided_slice %57 {offsets = [0, 0], sizes = [16, 128], strides = [1, 1]} : vector<34x128xf32> to vector<16x128xf32>
    %62 = arith.addf %61, %60 : vector<16x128xf32>
    %cst_67 = arith.constant 0.000000e+00 : f32
    %63 = vector.broadcast %cst_67 : f32 to vector<16x128xf32>
    %64 = arith.maximumf %62, %63 : vector<16x128xf32>
    %c0_68 = arith.constant 0 : index
    %c0_69 = arith.constant 0 : index
    %c0_70 = arith.constant 0 : index
    %65 = vector.load %arg8[%c0_68, %c0_69, %c0_70] : memref<2x16x128xf32, #tpu.memory_space<vmem>>, vector<1x16x128xf32>
    %66 = vector.shape_cast %65 : vector<1x16x128xf32> to vector<16x128xf32>
    %67 = vector.shape_cast %64 : vector<16x128xf32> to vector<1x16x128xf32>
    tpu.vector_store %arg8[%c0_68, %c0_69, %c0_70], %67 {strides = array<i32>} : memref<2x16x128xf32, #tpu.memory_space<vmem>>, vector<1x16x128xf32>,
    %c1_71 = arith.constant 1 : index
    %c0_72 = arith.constant 0 : index
    %c0_73 = arith.constant 0 : index
    %68 = vector.load %arg1[%c1_71, %c0_72, %c0_73] : memref<2x16x128xbf16, #tpu.memory_space<vmem>>, vector<1x16x128xbf16>
    %69 = vector.shape_cast %68 : vector<1x16x128xbf16> to vector<16x128xbf16>
    %70 = arith.extf %69 : vector<16x128xbf16> to vector<16x128xf32>
    %71 = vector.extract_strided_slice %57 {offsets = [18, 0], sizes = [16, 128], strides = [1, 1]} : vector<34x128xf32> to vector<16x128xf32>
    %72 = arith.addf %71, %70 : vector<16x128xf32>
    %cst_74 = arith.constant 0.000000e+00 : f32
    %73 = vector.broadcast %cst_74 : f32 to vector<16x128xf32>
    %74 = arith.maximumf %72, %73 : vector<16x128xf32>
    %c1_75 = arith.constant 1 : index
    %c0_76 = arith.constant 0 : index
    %c0_77 = arith.constant 0 : index
    %75 = vector.load %arg8[%c1_75, %c0_76, %c0_77] : memref<2x16x128xf32, #tpu.memory_space<vmem>>, vector<1x16x128xf32>
    %76 = vector.shape_cast %75 : vector<1x16x128xf32> to vector<16x128xf32>
    %77 = vector.shape_cast %74 : vector<16x128xf32> to vector<1x16x128xf32>
    tpu.vector_store %arg8[%c1_75, %c0_76, %c0_77], %77 {strides = array<i32>} : memref<2x16x128xf32, #tpu.memory_space<vmem>>, vector<1x16x128xf32>,
    return
  }
  func.func @transform_0(%arg0: i32) -> (i32, i32, i32) {
    %c0_i32 = arith.constant 0 : i32
    %c0_i32_0 = arith.constant 0 : i32
    %c0_i32_1 = arith.constant 0 : i32
    return %arg0, %c0_i32, %c0_i32_0 : i32, i32, i32
  }
  func.func @transform_1(%arg0: i32) -> (i32, i32, i32) {
    %c0_i32 = arith.constant 0 : i32
    %c0_i32_0 = arith.constant 0 : i32
    %c0_i32_1 = arith.constant 0 : i32
    %c0_i32_2 = arith.constant 0 : i32
    return %c0_i32, %c0_i32_0, %c0_i32_1 : i32, i32, i32
  }
  func.func @transform_2(%arg0: i32) -> (i32, i32, i32) {
    %c0_i32 = arith.constant 0 : i32
    %c0_i32_0 = arith.constant 0 : i32
    %c0_i32_1 = arith.constant 0 : i32
    %c0_i32_2 = arith.constant 0 : i32
    return %c0_i32, %c0_i32_0, %c0_i32_1 : i32, i32, i32
  }
  func.func @transform_3(%arg0: i32) -> (i32, i32) {
    %c0_i32 = arith.constant 0 : i32
    %c0_i32_0 = arith.constant 0 : i32
    %c0_i32_1 = arith.constant 0 : i32
    return %c0_i32, %c0_i32_0 : i32, i32
  }
  func.func @transform_4(%arg0: i32) -> (i32, i32) {
    %c0_i32 = arith.constant 0 : i32
    %c0_i32_0 = arith.constant 0 : i32
    %c0_i32_1 = arith.constant 0 : i32
    return %c0_i32, %c0_i32_0 : i32, i32
  }
  func.func @transform_5(%arg0: i32) -> (i32, i32) {
    %c0_i32 = arith.constant 0 : i32
    %c0_i32_0 = arith.constant 0 : i32
    %c0_i32_1 = arith.constant 0 : i32
    return %c0_i32, %c0_i32_0 : i32, i32
  }
  func.func @transform_6(%arg0: i32) -> (i32, i32) {
    %c0_i32 = arith.constant 0 : i32
    %c0_i32_0 = arith.constant 0 : i32
    %c0_i32_1 = arith.constant 0 : i32
    return %c0_i32, %c0_i32_0 : i32, i32
  }
  func.func @transform_7(%arg0: i32) -> (i32, i32, i32) {
    %c0_i32 = arith.constant 0 : i32
    %c0_i32_0 = arith.constant 0 : i32
    %c0_i32_1 = arith.constant 0 : i32
    return %arg0, %c0_i32, %c0_i32_0 : i32, i32, i32
  }
}

</mosaic_0001>

<bundles_post_ra>
// kernel: tpu_custom_call.1
= control target key start
LH: loop header
LB: loop body
LE: loop exit
PB: predicated region body
PF: predicated region fallthrough
CT: control target
= control target key end

     0   :  { %12 = vsyncpa [#allocation5], 0  ;;  %s2755_s0 = inlined_call_operand.hbm [shape: bf16[12,16,128], index: 0, kind: input, shape index: {}]   ;;  %s2756_s1 = inlined_call_operand.hbm [shape: bf16[3,128,128], index: 1, kind: input, shape index: {}]   ;;  %s2757_s2 = inlined_call_operand.hbm [shape: bf16[3,128,128], index: 2, kind: input, shape index: {}]   ;;  %s2758_s3 = inlined_call_operand.vmem [shape: f32[1,128], index: 3, kind: input, shape index: {}]   ;;  %s2759_s4 = inlined_call_operand.vmem [shape: f32[1,128], index: 4, kind: input, shape index: {}]   ;;  %s2760_s5 = inlined_call_operand.vmem [shape: f32[1,128], index: 5, kind: input, shape index: {}]   ;;  %s2761_s6 = inlined_call_operand.vmem [shape: f32[1,128], index: 6, kind: input, shape index: {}]   ;;  %s2762_s7 = inlined_call_operand.hbm [shape: f32[12,16,128], index: 7, kind: output, shape index: {}]  }
   0x1   :  { %14 = vsyncpa [#allocation5 + $0x1], 0 }
   0x2   :  { %15 = vsyncpa [#allocation8], 0 }
   0x3   :  { %16 = vsyncpa [#allocation6], 0 }
   0x4   :  { %18 = vsyncpa [#allocation6 + $0x1], 0  ;;  %s2290_s24 = smov 0   ;;  %s2292_s25 = smov 0  }
   0x5   :  { %s2294_s26 = smov 0   ;;  %s2296_s27 = smov 0  }
   0x6 LB: > { %s2311_s28 = sadd.s32 4294967295, %s2238_s27   ;;  %s1557_s29 = sadd.s32 4294967294, %s2238_s27   ;;  %s2238_s27 = sphi %s2296_s27, %s2799_s27   ;;  %s2234_s26 = sphi %s2294_s26, %s2798_s26   ;;  %s2230_s25 = sphi %s2292_s25, %s2797_s25   ;;  %s2226_s24 = sphi %s2290_s24, %s2796_s24  }
   0x7   : > { %p44_p0 = scmp.ne.s32.totalorder %s2230_s25, %s2226_s24  ;;  %p2763_p1 = scmp.eq.s32.totalorder %s2311_s28, 0 }
   0x8   : > { %p200_p3 = scmp.eq.s32.totalorder %s1557_s29, 5  ;;  %p1558_p5 = scmp.ge.s32.totalorder %s2238_s27, 1 }
   0x9   : > { %p2320_p4 = por %p2763_p1, %p44_p0  ;;  %p207_p7 = scmp.lt.s32.totalorder %s2238_s27, 7 }
   0xa   : > { %p2325_p6 = por %p200_p3, %p44_p0  ;;  %s2240_s10 = smov [#allocation7]  }
   0xb   : > { %s2767_s30 = scalar_select %p2320_p4, 1, 0 }
   0xc   : > { %s2768_s8 = scalar_select %p2325_p6, 1, 0 }
   0xd   : > { %p2330_p8 = pnand %p1558_p5, %p207_p7  ;;  %s219_s11 = sshll.u32 %s2240_s10, 4  ;;  %s220_s11 = int_to_ptr.vmem [resolvable:$true] %s219_s11 }
   0xe   : > { %s2241_s13 = smov [#allocation9]   ;;  %s2082_s17 = scalar_lea.hbm %s2756_s1, 3072 }
   0xf   : > { %s2769_s9 = scalar_select %p2330_p8, 1, 0 }
  0x10   : > { %p1963_p9 = pneg %p2330_p8  ;;  %s232_s14 = sshll.u32 %s2241_s13, 4  ;;  %s2342_s14 = int_to_ptr.vmem [resolvable:$true] %s232_s14 }
  0x11   : > { %p2083_p11 = scmp.ne.s32.totalorder %s2756_s1, %s2082_s17  ;;  %p2089_p3 = scmp.lt.u32.totalorder %s2082_s17, %s2756_s1 }
  0x12   : > { %p2338_p10 = pnand %p1963_p9, %p2763_p1 }
  0x14   : > { %p2084_p12 = pneg %p2338_p10 }
  0x16   : > { %p2085_p13 = pnand %p2084_p12, %p2083_p11 }
  0x18   : > { %p2086_p0 = pneg %p2085_p13 }
  0x1a   : > { %p2091_p5 = pnand %p2089_p3, %p2086_p0 }
  0x1c   : > { %2094 = shalt.err (!%p2091_p5)
}
  0x1d   : > { %s2095_s22 = scalar_lea.vmem %s220_s11, 3072  ;;  %p2103_p2 = scmp.lt.s32.totalorder %s220_s11, %s220_s11 }
  0x1e   : > { %p2096_p7 = scmp.ne.s32.totalorder %s220_s11, %s2095_s22  ;;  %p2104_p6 = scmp.lt.s32.totalorder %s2095_s22, %s2095_s22 }
  0x20   : > { %p2098_p9 = pnand %p2096_p7, %p2084_p12  ;;  %p2105_p4 = por %p2104_p6, %p2103_p2 }
  0x22   : > { %p2099_p1 = pneg %p2098_p9 }
  0x24   : > { %p2106_p8 = pnand %p2105_p4, %p2099_p1 }
  0x26   : > { %2109 = shalt.err (!%p2106_p8)
}
  0x27   : > { %s2766_s23 = smov 64   ;;  %s2243_s29 = smov 4  }
  0x28   : > { %1966 = dma.hbm_to_vmem [thread:$0]  (!%p2338_p10), %s2756_s1, 3072, %s220_s11, [#allocation8], %s2766_s23, %s2766_s23, %s2243_s29  }
  0x29   : > { %s2110_s17 = scalar_lea.hbm %s2757_s2, 3072 }
  0x2a   : > { %p2111_p1 = scmp.ne.s32.totalorder %s2757_s2, %s2110_s17  ;;  %p2117_p6 = scmp.lt.u32.totalorder %s2110_s17, %s2757_s2 }
  0x2c   : > { %p2113_p2 = pnand %p2111_p1, %p2084_p12 }
  0x2e   : > { %p2114_p4 = pneg %p2113_p2 }
  0x30   : > { %p2119_p8 = pnand %p2117_p6, %p2114_p4 }
  0x32   : > { %2122 = shalt.err (!%p2119_p8)
}
  0x33   : > { %s2123_s11 = scalar_lea.vmem %s2342_s14, 3072  ;;  %p2131_p3 = scmp.lt.s32.totalorder %s2342_s14, %s2342_s14 }
  0x34   : > { %p2124_p11 = scmp.ne.s32.totalorder %s2342_s14, %s2123_s11  ;;  %p2132_p5 = scmp.lt.s32.totalorder %s2123_s11, %s2123_s11 }
  0x36   : > { %p2126_p13 = pnand %p2124_p11, %p2084_p12  ;;  %p2133_p7 = por %p2132_p5, %p2131_p3 }
  0x38   : > { %p2127_p0 = pneg %p2126_p13 }
  0x3a   : > { %p2134_p9 = pnand %p2133_p7, %p2127_p0 }
  0x3c   : > { %2137 = shalt.err (!%p2134_p9)
}
  0x3d   : > { %1969 = dma.hbm_to_vmem [thread:$0]  (!%p2338_p10), %s2757_s2, 3072, %s2342_s14, [#allocation8], %s2766_s23, %s2766_s23, %s2243_s29  }
  0x3e   : > { %s2398_s12 = sadd.s32 1, %s2238_s27   ;;  %s31_s13 = sadd.s32 1, %s2234_s26 }
  0x3f   : > { %s28_s15 = ssub.s32 %s2238_s27, %s2398_s12  ;;  %p38_p12 = scmp.ne.s32.totalorder %s2234_s26, %s2230_s25 }
  0x40   : > { %p29_p1 = scmp.eq.s32.totalorder %s28_s15, 0  ;;  %p39_p2 = scmp.eq.s32.totalorder %s2238_s27, 0 }
  0x41   : > { %p2771_p4 = scmp.eq.s32.totalorder %s2311_s28, 5  ;;  %p1980_p8 = scmp.lt.s32.totalorder %s2238_s27, 6 }
  0x42   : > { %s2414_s17 = scalar_select %p29_p1, %s2234_s26, %s31_s13  }
  0x43   : > { %p2408_p6 = por %p2771_p4, %p38_p12  ;;  %p40_p11 = por %p39_p2, %p38_p12 }
  0x44   : > { %s258_s18 = sand.u32 1, %s2234_s26   ;;  %s1652_s14 = sshll.u32 %s2238_s27, 8 }
  0x45   : > { %s1562_s19 = sshll.u32 %s258_s18, 4  ;;  %s2421_s11 = scalar_lea.hbm %s2755_s0, %s1652_s14 }
  0x46   : > { %s262_s22 = scalar_lea.vmem [#allocation4], %s1562_s19  ;;  %p2425_p10 = pnand %p1980_p8, %p40_p11 }
  0x47   : > { %s270_s10 = sshll.u32 %s262_s22, 4  ;;  %s2429_s15 = scalar_lea.sflag [#allocation5], %s258_s18  ;;  %s2423_s10 = int_to_ptr.vmem [resolvable:$true] %s270_s10 }
  0x48   : > { %s2138_s23 = scalar_lea.hbm %s2421_s11, 256  ;;  %p2140_p0 = pneg %p2425_p10 }
  0x49   : > { %p2139_p13 = scmp.ne.s32.totalorder %s2421_s11, %s2138_s23  ;;  %s2143_s20 = scalar_lea.hbm %s2755_s0, 1536 }
  0x4a   : > { %p2144_p7 = scmp.lt.u32.totalorder %s2421_s11, %s2755_s0  ;;  %p2145_p9 = scmp.lt.u32.totalorder %s2143_s20, %s2138_s23 }
  0x4b   : > { %p2141_p3 = pnand %p2140_p0, %p2139_p13  ;;  %p2147_p1 = scmp.lt.u32.totalorder %s2138_s23, %s2421_s11 }
  0x4c   : > { %p2146_p12 = por %p2145_p9, %p2144_p7 }
  0x4d   : > { %p2142_p5 = pneg %p2141_p3 }
  0x4e   : > { %p2148_p2 = por %p2147_p1, %p2146_p12 }
  0x50   : > { %p2149_p4 = pnand %p2148_p2, %p2142_p5 }
  0x52   : > { %2152 = shalt.err (!%p2149_p4)
}
  0x53   : > { %s2153_s18 = scalar_lea.vmem %s2423_s10, 256  ;;  %s2244_s19 = smov [#allocation4]  }
  0x54   : > { %p2154_p8 = scmp.ne.s32.totalorder %s2423_s10, %s2153_s18  ;;  %s2158_s14 = sshll.u32 %s2244_s19, 4  ;;  %s2159_s14 = int_to_ptr.vmem [resolvable:$false] %s2158_s14 }
  0x55   : > { %s2160_s21 = scalar_lea.vmem %s2159_s14, 512  ;;  %p2161_p3 = scmp.lt.s32.totalorder %s2423_s10, %s2159_s14 }
  0x56   : > { %p2156_p11 = pnand %p2154_p8, %p2140_p0  ;;  %p2162_p7 = scmp.lt.s32.totalorder %s2160_s21, %s2153_s18 }
  0x58   : > { %p2157_p13 = pneg %p2156_p11  ;;  %p2163_p9 = por %p2162_p7, %p2161_p3 }
  0x5a   : > { %p2164_p12 = pnand %p2163_p9, %p2157_p13 }
  0x5c   : > { %2167 = shalt.err (!%p2164_p12)
}
  0x5d   : > { %s2774_s23 = smov 64   ;;  %p2775_p0 = scmp.ne.s32.totalorder %s2769_s9, 0 }
  0x5e   : > { %1973 = dma.hbm_to_vmem [thread:$0]  (!%p2425_p10), %s2421_s11, 256, %s2423_s10, %s2429_s15, %s2774_s23, %s2774_s23, %s2243_s29  }
  0x5f   : > { %282 = sbr.rel (%p2775_p0) target bundleno = 776 (0x308), region = 48  ;;  %s2463_s20 = sand.u32 (!%p2775_p0), 1, %s2230_s25  }
  0x60   : > { %s1567_s22 = sshll.u32 (!%p2775_p0), %s2463_s20, 4  ;;  %s285_s18 = scalar_lea.sflag (!%p2775_p0), [#allocation5], %s2463_s20 }
  0x61   : > { %s2467_s19 = scalar_lea.vmem (!%p2775_p0), [#allocation4], %s1567_s22  ;;  %p2776_p5 = scmp.ne.s32.totalorder (!%p2775_p0), %s2767_s30, 0 }
  0x66   : > { %2213 = dma.done.wait (%p2776_p5), %s285_s18, 256  }
  0x67   : > { %2215 = vsyncadd (%p2776_p5), %s285_s18, 4294967040  ;;  %p2777_p10 = scmp.eq.s32.totalorder %s2311_s28, 0 }
  0x69   : > { %2217 = dma.done.wait (%p2777_p10), [#allocation8], 6144   ;;  %p2778_p1 = pmov %p2777_p10 }
  0x6a   : > { %v2245_v0 = vmov 0.0   ;;  %vm2246_vm0 = vmmov 0   ;;  %vm331_vm1 = vsmask.f32 256  ;;  %vm343_vm2 = vsmask.f32 1282 }
  0x6b   : > { %2219 = vsyncadd (%p2778_p1), [#allocation8], 4294961152  ;;  %1735 = vmatprep.subr.bf16.mxu0 %v2245_v0  ;;  %1751 = vmatprep.mubr.msk.bf16.mxu0 %vm2246_vm0, %v2245_v0  ;;  %v2024_v1 = vld [vmem:[#allocation7 + $0x40] sm:$0xff]   ;;  %vm330_vm3 = vcmask 1040384   ;;  %vm350_vm4 = vsmask.f32 4368 }
  0x6c   : > { %1819 = vmatprep.subr.bf16.mxu1 %v2245_v0  ;;  %1835 = vmatprep.mubr.msk.bf16.mxu1 %vm2246_vm0, %v2245_v0  ;;  %v2025_v2 = vld [vmem:[#allocation7 + $0x48] sm:$0xff]   ;;  %vm337_vm5 = vsmask.f32 7942  ;;  %vm342_vm6 = vcmask 1041408   ;;  %vm373_vm7 = vsmask.f32 7938  ;;  %vm2485_vm8 = vmand %vm330_vm3, %vm331_vm1 }
  0x6d   : > { %1736 = vmatpush3.bf16.msra.mxu0 %v2024_v1  ;;  %vm385_vm9 = vsmask.f32 1280  ;;  %vm2490_vm10 = vmand %vm342_vm6, %vm343_vm2  ;;  %vm386_vm11 = vsmask.f32 5392  ;;  %v2026_v5 = vld [vmem:[#allocation7 + $0x50] sm:$0xff]   ;;  %vm372_vm12 = vcmask 1043456  }
  0x6e   : > { %1737 = vmatprep.subr.bf16.mxu0 %v2245_v0  ;;  %vm410_vm13 = vcmask 1043457   ;;  %vm336_vm14 = vcmask 1041409   ;;  %v2027_v6 = vld [vmem:[#allocation7 + $0x58] sm:$0xff]   ;;  %v345_v8 = vld [vmem:[#allocation2 + $0x8] sm:$0x3]  ;;  %vm2503_vm15 = vmor %vm331_vm1, %vm350_vm4  ;;  %s1570_s21 = sshll.u32 %s2463_s20, 5 }
  0x6f   : > { %v333_v7 = vld [vmem:[#allocation2] sm:$0x1]  ;;  %v348_v9 = vld [vmem:[%s2467_s19] sm:$0xf]  ;;  %v346_v11 = vsel %vm2490_vm10, 0, %v345_v8  ;;  %vm2512_vm2 = vmand %vm372_vm12, %vm373_vm7  ;;  %s2697_s23 = scalar_lea.vmem [#allocation10], %s1570_s21 }
  0x70   : > { %v334_v10 = vsel %vm2485_vm8, 0, %v333_v7  ;;  %v349_v12 = vld [vmem:[%s2467_s19 + $0x4] sm:$0xf]  ;;  %v353_v13 = vshrl.u32 %v348_v9, 16  ;;  %v356_v14 = vshll.u32 %v348_v9, 16  ;;  %vm2518_vm1 = vmor %vm385_vm9, %vm386_vm11  ;;  %v2029_v47 = vld [vmem:[#allocation7 + $0x68] sm:$0xff]  }
  0x71   : > { %1738 = vmatpush3.bf16.msra.mxu0 %v2025_v2  ;;  %335 = vst [vmem:[#allocation2] sm:$0x1] %v334_v10  ;;  %347 = vst [vmem:[#allocation2 + $0x8] sm:$0x3] %v346_v11  ;;  %v361_v16 = vshrl.u32 %v349_v12, 16  ;;  %v364_v17 = vshll.u32 %v349_v12, 16 }
  0x72   : > { %1739 = vmatprep.subr.bf16.mxu0 %v2245_v0  ;;  %v1571_v18 = vld [vmem:[%s2467_s19 + $0x8] sm:$0xf]  ;;  %v1572_v19 = vld [vmem:[%s2467_s19 + $0xc] sm:$0xf]  ;;  %v355_v20 = vrot.slane %v353_v13, 7  ;;  %vm2524_vm3 = vmand %vm410_vm13, %vm337_vm5  ;;  %s1465_s22 = sshll.u32 %s2697_s23, 4  ;;  %s2706_s22 = int_to_ptr.vmem [resolvable:$true] %s1465_s22 }
  0x73   : > { %v389_v22 = vshrl.u32 %v1571_v18, 16  ;;  %v392_v23 = vshll.u32 %v1571_v18, 16  ;;  %v398_v24 = vshrl.u32 %v1572_v19, 16  ;;  %v363_v25 = vrot.slane %v361_v16, 7  ;;  %v2028_v33 = vld [vmem:[#allocation7 + $0x60] sm:$0xff]   ;;  %vm2530_vm4 = vmand %vm336_vm14, %vm337_vm5  ;;  %v2030_v53 = vld [vmem:[#allocation7 + $0x70] sm:$0xff]  }
  0x74   : > { %v401_v27 = vshll.u32 %v1572_v19, 16  ;;  %v358_v28 = vor.u32 %v356_v14, %v355_v20  ;;  %v359_v29 = vrot.slane %v355_v20, 4  ;;  %v339_v42 = vld [vmem:[#allocation2 + $0x10] sm:$0x2]  ;;  %vm2551_vm5 = vmand %vm342_vm6, %vm385_vm9  ;;  %v2031_v58 = vld [vmem:[#allocation7 + $0x78] sm:$0xff]   ;;  %vm734_vm9 = vcmask 1046528  }
  0x75   : > { %1740 = vmatpush3.bf16.msra.mxu0 %v2026_v5  ;;  %v391_v30 = vrot.slane %v389_v22, 6  ;;  %v394_v31 = vrot.slane %v392_v23, 7  ;;  %v366_v34 = vor.u32 %v364_v17, %v363_v25  ;;  %v368_v35 = vrot.slane %v363_v25, 4  ;;  %v2034_v7 = vld [vmem:[#allocation7] sm:$0xff]   ;;  %v2035_v17 = vld [vmem:[#allocation7 + $0x8] sm:$0xff]   ;;  %v2036_v26 = vld [vmem:[#allocation7 + $0x10] sm:$0xff]  }
  0x76   : > { %1741 = vmatprep.subr.bf16.mxu0 %v2245_v0  ;;  %v400_v36 = vrot.slane %v398_v24, 6  ;;  %v403_v37 = vrot.slane %v401_v27, 7  ;;  %v340_v46 = vsel %vm2530_vm4, 0, %v339_v42  ;;  %vm472_vm7 = vsmask.f32 7424  ;;  %v2041_v32 = vld [vmem:[#allocation7 + $0x30] sm:$0xff]  }
  0x77   : > { %v395_v39 = vor.u32 %v394_v31, %v391_v30  ;;  %v367_v40 = vsel %vm2503_vm15, %v359_v29, %v366_v34  ;;  %341 = vst [vmem:[#allocation2 + $0x10] sm:$0x2] %v340_v46  ;;  %v2039_v29 = vld [vmem:[#allocation7 + $0x20] sm:$0xff]   ;;  %v2040_v31 = vld [vmem:[#allocation7 + $0x28] sm:$0xff]   ;;  %v2050_v42 = vld [vmem:[#allocation7 + $0xb0] sm:$0xff]   ;;  %s1659_s18 = sshll.u32 %s2311_s28, 9 }
  0x78   : > { %v404_v41 = vor.u32 %v403_v37, %v400_v36  ;;  %v375_v43 = vld [vmem:[#allocation2] sm:$0xf]  ;;  %378 = vst [vmem:[#allocation2 + $0x4] sm:$0xf] %v367_v40  ;;  %v379_v44 = vld [vmem:[#allocation2 + $0x8] sm:$0x1]  ;;  %s2711_s9 = scalar_lea.hbm %s2762_s7, %s1659_s18 }
  0x79   : > { %1742 = vmatpush3.bf16.msra.mxu0 %v2027_v6  ;;  %v396_v45 = vrot.slane %v395_v39, 4  ;;  %v376_v48 = vsel %vm2512_vm2, %v358_v28, %v375_v43  ;;  %v380_v49 = vsel %vm2485_vm8, %v368_v35, %v379_v44  ;;  %v412_v50 = vld [vmem:[#allocation2 + $0x8] sm:$0xe]  ;;  %v2037_v28 = vld [vmem:[#allocation7 + $0x18] sm:$0xff]   ;;  %v2044_v35 = vld [vmem:[#allocation7 + $0x88] sm:$0xff]   ;;  %s1451_s29 = scalar_lea.sflag [#allocation6], %s2463_s20 }
  0x7a   : > { %1743 = vmatprep.subr.bf16.mxu0 %v2245_v0  ;;  %377 = vst [vmem:[#allocation2] sm:$0xf] %v376_v48  ;;  %381 = vst [vmem:[#allocation2 + $0x8] sm:$0x1] %v380_v49  ;;  %v413_v52 = vsel %vm2524_vm3, %v395_v39, %v412_v50  ;;  %v406_v54 = vrot.slane %v404_v41, 4  ;;  %v2043_v34 = vld [vmem:[#allocation7 + $0x80] sm:$0xff]  }
  0x7b   : > { %v405_v51 = vsel %vm2518_vm1, %v396_v45, %v404_v41  ;;  %414 = vst [vmem:[#allocation2 + $0x8] sm:$0xe] %v413_v52  ;;  %v2045_v36 = vld [vmem:[#allocation7 + $0x90] sm:$0xff]   ;;  %v2046_v37 = vld [vmem:[#allocation7 + $0x98] sm:$0xff]   ;;  %v2047_v40 = vld [vmem:[#allocation7 + $0xa0] sm:$0xff]   ;;  %s2168_s11 = scalar_lea.vmem %s2706_s22, 512 }
  0x7c   : > { %415 = vst [vmem:[#allocation2 + $0xc] sm:$0xf] %v405_v51  ;;  %v2048_v41 = vld [vmem:[#allocation7 + $0xa8] sm:$0xff]   ;;  %v2051_v43 = vld [vmem:[#allocation7 + $0xb8] sm:$0xff]   ;;  %v2053_v44 = vld [vmem:[#allocation9 + $0x40] sm:$0xff]   ;;  %p2169_p2 = scmp.ne.s32.totalorder %s2706_s22, %s2168_s11  ;;  %s2247_s28 = smov [#allocation10]  }
  0x7d   : > { %1744 = vmatpush3.bf16.msra.mxu0 %v2028_v33  ;;  %v2042_v33 = vld [vmem:[#allocation7 + $0x38] sm:$0xff]   ;;  %1820 = vmatpush3.bf16.msra.mxu1 %v2053_v44  ;;  %v2054_v45 = vld [vmem:[#allocation9 + $0x48] sm:$0xff]   ;;  %v2055_v46 = vld [vmem:[#allocation9 + $0x50] sm:$0xff]   ;;  %s2172_s10 = sshll.u32 %s2247_s28, 4  ;;  %s2173_s10 = int_to_ptr.vmem [resolvable:$false] %s2172_s10 }
  0x7e   : > { %1745 = vmatprep.subr.bf16.mxu0 %v2245_v0  ;;  %v417_v57 = vld [vmem:[#allocation2 + $0x10] sm:$0x3]  ;;  %1821 = vmatprep.subr.bf16.mxu1 %v2245_v0  ;;  %v2057_v48 = vld [vmem:[#allocation9 + $0x60] sm:$0xff]   ;;  %v2059_v50 = vld [vmem:[#allocation9 + $0x70] sm:$0xff]   ;;  %p2170_p4 = pnand %p2169_p2, %p2408_p6  ;;  %s2174_s13 = scalar_lea.vmem %s2173_s10, 1024 }
  0x7f   : > { %v421_v56 = vld [vmem:[#allocation2 + $0x4] sm:$0xf]  ;;  %v418_v60 = vsel %vm2551_vm5, %v406_v54, %v417_v57  ;;  %v2058_v49 = vld [vmem:[#allocation9 + $0x68] sm:$0xff]   ;;  %v1602_v52 = vld [vmem:[%s2758_s3] ss:$0 sm:$0xff]  ;;  %p2175_p11 = scmp.lt.s32.totalorder %s2706_s22, %s2173_s10  ;;  %p2176_p13 = scmp.lt.s32.totalorder %s2174_s13, %s2168_s11 }
  0x80   : > { %419 = vst [vmem:[#allocation2 + $0x10] sm:$0x3] %v418_v60  ;;  %v2060_v51 = vld [vmem:[#allocation9 + $0x78] sm:$0xff]   ;;  %p2171_p8 = pneg %p2170_p4 }
  0x81   : > { %1746 = vmatpush3.bf16.msra.mxu0 %v2029_v47  ;;  %v420_v59 = vld [vmem:[#allocation2] sm:$0xf]  ;;  %1822 = vmatpush3.bf16.msra.mxu1 %v2054_v45  ;;  %p2177_p3 = por %p2176_p13, %p2175_p11 }
  0x82   : > { %1747 = vmatprep.subr.bf16.mxu0 %v2245_v0  ;;  %v1573_v61 = vcombine.low %v420_v59, %v421_v56  ;;  %v713_v10 = vld [vmem:[#allocation2] sm:$0xe]  ;;  %1823 = vmatprep.subr.bf16.mxu1 %v2245_v0  ;;  %v1603_v54 = vld [vmem:[%s2759_s4] ss:$0 sm:$0xff] }
  0x83   : > { %v2558_v62 = vld [vmem:[#allocation2 + $0x8] sm:$0xff]   ;;  %v1593_v12 = vcombine.low %v713_v10, %v421_v56  ;;  %v2056_v47 = vld [vmem:[#allocation9 + $0x58] sm:$0xff]   ;;  %p2178_p7 = pnand %p2177_p3, %p2171_p8 }
  0x84   : > { %v474_v63 = vshrl.u32 %v1573_v61, 16  ;;  %v476_v1 = vshll.u32 %v1573_v61, 16  ;;  %v481_v2 = vshll.u32 %v2558_v62, 16  ;;  %v485_v8 = vshrl.u32 %v2558_v62, 16 }
  0x85   : > { %1748 = vmatpush3.bf16.msra.mxu0 %v2030_v53  ;;  %v736_v9 = vrot.slane %v2558_v62, 1  ;;  %v735_v16 = vrot.slane %v1593_v12, 1  ;;  %1824 = vmatpush3.bf16.msra.mxu1 %v2055_v46 }
  0x86   : > { %1749 = vmatprep.subr.bf16.mxu0 %v2245_v0  ;;  %v478_v5 = vrot.slane %v476_v1, 1  ;;  %v483_v6 = vrot.slane %v481_v2, 1  ;;  %1825 = vmatprep.subr.bf16.mxu1 %v2245_v0 }
  0x87   : > { %v2564_v13 = vld [vmem:[#allocation2 + $0x10] ss:$0 sps:$4 sm:$0x33]   ;;  %v737_v22 = vsel %vm734_vm9, %v735_v16, %v736_v9 }
  0x88   : > { %v479_v11 = vor.u32 %v478_v5, %v474_v63  ;;  %v489_v18 = vshll.u32 %v2564_v13, 16  ;;  %v738_v19 = vrot.slane %v2564_v13, 1  ;;  %v487_v20 = vor.u32 %v485_v8, %v483_v6  ;;  %v2049_v39 = vld [vmem:[#allocation2 + $0x10] ss:$0 sps:$4 sm:$0x11]  }
  0x89   : > { %1750 = vmatpush3.bf16.msra.mxu0 %v2031_v58  ;;  %v493_v24 = vshrl.u32 %v2564_v13, 16  ;;  %1826 = vmatpush3.bf16.msra.mxu1 %v2056_v47 }
  0x8a   : > { %1763 = vmatprep.subr.bf16.mxu0 %v2245_v0  ;;  %v484_v14 = vsel %vm472_vm7, %v479_v11, %v483_v6  ;;  %v491_v23 = vrot.slane %v489_v18, 1  ;;  %v739_v25 = vsel %vm734_vm9, %v736_v9, %v738_v19  ;;  %1827 = vmatprep.subr.bf16.mxu1 %v2245_v0 }
  0x8c   : > { %1752 = vmatmul.mubr.bf16.vlgmr.msra.gmra.mrb[0].mxu0 %v484_v14  ;;  %v492_v27 = vsel %vm472_vm7, %v487_v20, %v491_v23  ;;  %v495_v30 = vor.u32 %v493_v24, %v491_v23 }
  0x8d   : > { %1764 = vmatpush3.bf16.msra.mxu0 %v2034_v7  ;;  %1755 = vmatprep.mubr.msk.bf16.mxu0 %vm2246_vm0, %v2245_v0 }
  0x8e   : > { %1765 = vmatprep.subr.bf16.mxu0 %v2245_v0  ;;  %1828 = vmatpush3.bf16.msra.mxu1 %v2057_v48 }
  0x8f   : > { %1829 = vmatprep.subr.bf16.mxu1 %v2245_v0 }
  0x91   : > { %1766 = vmatpush3.bf16.msra.mxu0 %v2035_v17  ;;  %v945_v17 = vld [vmem:[#allocation3] sm:$0xf] }
  0x92   : > { %1767 = vmatprep.subr.bf16.mxu0 %v2245_v0  ;;  %1830 = vmatpush3.bf16.msra.mxu1 %v2058_v49 }
  0x93   : > { %1831 = vmatprep.subr.bf16.mxu1 %v2245_v0 }
  0x94   : > { %1756 = vmatmul.mubr.bf16.gmra.mrb[4].mxu0 %v492_v27 }
  0x95   : > { %1768 = vmatpush3.bf16.msra.mxu0 %v2036_v26  ;;  %1759 = vmatprep.mubr.msk.bf16.mxu0 %vm2246_vm0, %v2245_v0 }
  0x96   : > { %1769 = vmatprep.subr.bf16.mxu0 %v2245_v0  ;;  %1832 = vmatpush3.bf16.msra.mxu1 %v2059_v50 }
  0x97   : > { %1833 = vmatprep.subr.bf16.mxu1 %v2245_v0 }
  0x99   : > { %1770 = vmatpush3.bf16.msra.mxu0 %v2037_v28 }
  0x9a   : > { %1771 = vmatprep.subr.bf16.mxu0 %v2245_v0  ;;  %1834 = vmatpush3.bf16.msra.mxu1 %v2060_v51 }
  0x9b   : > { %1847 = vmatprep.subr.bf16.mxu1 %v2245_v0 }
  0x9c   : > { %1760 = vmatmul.mubr.bf16.gmra.mrb[8].mxu0 %v495_v30 }
  0x9d   : > { %1772 = vmatpush3.bf16.msra.mxu0 %v2039_v29  ;;  %1779 = vmatprep.mubr.msk.bf16.mxu0 %vm2246_vm0, %v2245_v0 }
  0x9e   : > { %1773 = vmatprep.subr.bf16.mxu0 %v2245_v0 }
  0xa1   : > { %1774 = vmatpush3.bf16.msra.mxu0 %v2040_v31 }
  0xa2   : > { %1775 = vmatprep.subr.bf16.mxu0 %v2245_v0 }
  0xa5   : > { %1776 = vmatpush3.bf16.msra.mxu0 %v2041_v32 }
  0xa6   : > { %1777 = vmatprep.subr.bf16.mxu0 %v2245_v0 }
  0xa9   : > { %1778 = vmatpush3.bf16.msra.mxu0 %v2042_v33 }
  0xaa   : > { %1791 = vmatprep.subr.bf16.mxu0 %v2245_v0 }
  0xac   : > { %1780 = vmatmul.mubr.bf16.vlgmr.msra.gmra.mrb[0].mxu0 %v1573_v61 }
  0xad   : > { %1792 = vmatpush3.bf16.msra.mxu0 %v2043_v34  ;;  %1783 = vmatprep.mubr.msk.bf16.mxu0 %vm2246_vm0, %v2245_v0 }
  0xae   : > { %1793 = vmatprep.subr.bf16.mxu0 %v2245_v0 }
  0xb1   : > { %1794 = vmatpush3.bf16.msra.mxu0 %v2044_v35 }
  0xb2   : > { %1795 = vmatprep.subr.bf16.mxu0 %v2245_v0 }
  0xb4   : > { %1784 = vmatmul.mubr.bf16.gmra.mrb[4].mxu0 %v2558_v62 }
  0xb5   : > { %1796 = vmatpush3.bf16.msra.mxu0 %v2045_v36  ;;  %1787 = vmatprep.mubr.msk.bf16.mxu0 %vm2246_vm0, %v2245_v0 }
  0xb6   : > { %1797 = vmatprep.subr.bf16.mxu0 %v2245_v0 }
  0xb9   : > { %1798 = vmatpush3.bf16.msra.mxu0 %v2046_v37 }
  0xba   : > { %1799 = vmatprep.subr.bf16.mxu0 %v2245_v0 }
  0xbc   : > { %1788 = vmatmul.mubr.bf16.gmra.mrb[8].mxu0 %v2049_v39 }
  0xbd   : > { %1800 = vmatpush3.bf16.msra.mxu0 %v2047_v40  ;;  %1807 = vmatprep.mubr.msk.bf16.mxu0 %vm2246_vm0, %v2245_v0 }
  0xbe   : > { %1801 = vmatprep.subr.bf16.mxu0 %v2245_v0 }
  0xc1   : > { %1802 = vmatpush3.bf16.msra.mxu0 %v2048_v41 }
  0xc2   : > { %1803 = vmatprep.subr.bf16.mxu0 %v2245_v0 }
  0xc5   : > { %1804 = vmatpush3.bf16.msra.mxu0 %v2050_v42 }
  0xc6   : > { %1805 = vmatprep.subr.bf16.mxu0 %v2245_v0 }
  0xc9   : > { %1806 = vmatpush3.bf16.msra.mxu0 %v2051_v43 }
  0xcc   : > { %1808 = vmatmul.mubr.bf16.vlgmr.msra.gmra.mrb[0].mxu0 %v737_v22 }
  0xcd   : > { %1811 = vmatprep.mubr.msk.bf16.mxu0 %vm2246_vm0, %v2245_v0 }
  0xd4   : > { %1812 = vmatmul.mubr.bf16.gmra.mrb[4].mxu0 %v739_v25 }
  0xd5   : > { %1815 = vmatprep.mubr.msk.bf16.mxu0 %vm2246_vm0, %v2245_v0 }
  0xdc   : > { %1816 = vmatmul.mubr.bf16.gmra.mrb[8].mxu0 %v738_v19 }
 0x19f   : > { %v825_v53 = vpop.f32.mrb[0].mxu0 }
 0x1a0   : > { %v859_v56 = vmul.f32 %v1602_v52, %v825_v53  ;;  %v1809_v57 = vpop.f32.mrb[1].mxu0 }
 0x1a1   : > { %v828_v58 = vpop.f32.mrb[2].mxu0 }
 0x1a2   : > { %v871_v59 = vadd.f32 %v1603_v54, %v859_v56  ;;  %v860_v60 = vmul.f32 %v1602_v52, %v828_v58  ;;  %v1810_v61 = vpop.f32.mrb[3].mxu0 }
 0x1a4   : > { %v876_v62 = vmax.f32 %v871_v59, 0.0  ;;  %v872_v63 = vadd.f32 %v1603_v54, %v860_v60  ;;  %v951_v60 = vld [vmem:[#allocation3 + $0x10] sm:$0x3] }
 0x1a6   : > { %v1653_v1 = vpack.c.bf16 %v876_v62, %v876_v62  ;;  %v877_v2 = vmax.f32 %v872_v63, 0.0 }
 0x1a7   : > { %v833_v5 = vpop.f32.mrb[4].mxu0 }
 0x1a8   : > { %v898_v6 = vshrl.u32 %v1653_v1, 16  ;;  %v1654_v7 = vpack.c.bf16 %v877_v2, %v877_v2  ;;  %v861_v8 = vmul.f32 %v1602_v52, %v833_v5  ;;  %v1813_v9 = vpop.f32.mrb[5].mxu0  ;;  %v901_v12 = vshll.u32 %v1653_v1, 16 }
 0x1a9   : > { %v836_v10 = vpop.f32.mrb[6].mxu0 }
 0x1aa   : > { %v900_v11 = vrot.slane %v898_v6, 7  ;;  %v906_v13 = vshrl.u32 %v1654_v7, 16  ;;  %v873_v14 = vadd.f32 %v1603_v54, %v861_v8  ;;  %v1814_v16 = vpop.f32.mrb[7].mxu0  ;;  %v862_v18 = vmul.f32 %v1602_v52, %v836_v10 }
 0x1ab   : > { %v909_v22 = vshll.u32 %v1654_v7, 16 }
 0x1ac   : > { %v903_v19 = vor.u32 %v901_v12, %v900_v11  ;;  %v908_v20 = vrot.slane %v906_v13, 7  ;;  %v878_v23 = vmax.f32 %v873_v14, 0.0  ;;  %v874_v24 = vadd.f32 %v1603_v54, %v862_v18 }
 0x1ad   : > { %v904_v25 = vrot.slane %v900_v11, 4 }
 0x1ae   : > { %v946_v26 = vsel %vm2512_vm2, %v903_v19, %v945_v17  ;;  %v911_v27 = vor.u32 %v909_v22, %v908_v20  ;;  %v1655_v28 = vpack.c.bf16 %v878_v23, %v878_v23  ;;  %v879_v29 = vmax.f32 %v874_v24, 0.0  ;;  %v2063_v17 = vld [vmem:[#allocation9] sm:$0xff]  }
 0x1af   : > { %947 = vst [vmem:[#allocation3] sm:$0xf] %v946_v26  ;;  %v841_v30 = vpop.f32.mrb[8].mxu0  ;;  %v913_v42 = vrot.slane %v908_v20, 4  ;;  %v2064_v20 = vld [vmem:[#allocation9 + $0x8] sm:$0xff]  }
 0x1b0   : > { %v912_v31 = vsel %vm2503_vm15, %v904_v25, %v911_v27  ;;  %v915_v32 = vshrl.u32 %v1655_v28, 16  ;;  %v863_v33 = vmul.f32 %v1602_v52, %v841_v30  ;;  %v1817_v34 = vpop.f32.mrb[9].mxu0  ;;  %v1656_v35 = vpack.c.bf16 %v879_v29, %v879_v29  ;;  %v2065_v25 = vld [vmem:[#allocation9 + $0x10] sm:$0xff]   ;;  %v2067_v30 = vld [vmem:[#allocation9 + $0x18] sm:$0xff]  }
 0x1b1   : > { %948 = vst [vmem:[#allocation3 + $0x4] sm:$0xf] %v912_v31  ;;  %v844_v36 = vpop.f32.mrb[10].mxu0  ;;  %v918_v39 = vshll.u32 %v1655_v28, 16  ;;  %v2068_v31 = vld [vmem:[#allocation9 + $0x20] sm:$0xff]   ;;  %v2069_v34 = vld [vmem:[#allocation9 + $0x28] sm:$0xff]  }
 0x1b2   : > { %v917_v37 = vrot.slane %v915_v32, 7  ;;  %v875_v40 = vadd.f32 %v1603_v54, %v863_v33  ;;  %v1818_v41 = vpop.f32.mrb[11].mxu0  ;;  %v924_v21 = vshrl.u32 %v1656_v35, 16  ;;  %v927_v46 = vshll.u32 %v1656_v35, 16  ;;  %v2070_v35 = vld [vmem:[#allocation9 + $0x30] sm:$0xff]   ;;  %v2071_v36 = vld [vmem:[#allocation9 + $0x38] sm:$0xff]  }
 0x1b3   : > { %v2075_v41 = vld [vmem:[#allocation9 + $0x98] sm:$0xff]  }
 0x1b4   : > { %v920_v43 = vor.u32 %v918_v39, %v917_v37  ;;  %v880_v44 = vmax.f32 %v875_v40, 0.0  ;;  %v926_v45 = vrot.slane %v924_v21, 7  ;;  %v922_v51 = vrot.slane %v917_v37, 4  ;;  %v2072_v37 = vld [vmem:[#allocation9 + $0x80] sm:$0xff]   ;;  %v2073_v39 = vld [vmem:[#allocation9 + $0x88] sm:$0xff]   ;;  %v2074_v40 = vld [vmem:[#allocation9 + $0x90] sm:$0xff]  }
 0x1b5   : > { %v2077_v21 = vld [vmem:[#allocation9 + $0xa0] sm:$0xff]  }
 0x1b6   : > { %v954_v47 = vld [vmem:[#allocation3] sm:$0x1]  ;;  %v921_v48 = vsel %vm2503_vm15, %v913_v42, %v920_v43  ;;  %v1657_v49 = vpack.c.bf16 %v880_v44, %v880_v44  ;;  %v929_v52 = vor.u32 %v927_v46, %v926_v45  ;;  %v931_v58 = vrot.slane %v926_v45, 4  ;;  %v1255_v7 = vld [vmem:[#allocation3] sm:$0xe]  ;;  %v2079_v44 = vld [vmem:[#allocation9 + $0xb0] sm:$0xff]  }
 0x1b7   : > { %v955_v50 = vsel %vm2485_vm8, 0, %v954_v47  ;;  %949 = vst [vmem:[#allocation3 + $0x8] sm:$0xf] %v921_v48  ;;  %v2078_v43 = vld [vmem:[#allocation9 + $0xa8] sm:$0xff]   ;;  %v2080_v45 = vld [vmem:[#allocation9 + $0xb8] sm:$0xff]   ;;  %v1661_v47 = vld [vmem:[%s2467_s19] sm:$0xff]  }
 0x1b8   : > { %956 = vst [vmem:[#allocation3] sm:$0x1] %v955_v50  ;;  %v933_v53 = vshrl.u32 %v1657_v49, 16  ;;  %v930_v54 = vsel %vm2503_vm15, %v922_v51, %v929_v52  ;;  %v936_v57 = vshll.u32 %v1657_v49, 16  ;;  %v964_v2 = vld [vmem:[#allocation3 + $0x4] sm:$0xf]  ;;  %v1662_v51 = vunpack.c.l.bf16 %v1661_v47 }
 0x1b9   : > { %950 = vst [vmem:[#allocation3 + $0xc] sm:$0xf] %v930_v54  ;;  %v1629_v8 = vcombine.low %v1255_v7, %v964_v2  ;;  %v1638_v46 = vld [vmem:[%s2760_s5] ss:$0 sm:$0xff] }
 0x1ba   : > { %v935_v56 = vrot.slane %v933_v53, 7  ;;  %v1639_v49 = vld [vmem:[%s2761_s6] ss:$0 sm:$0xff] }
 0x1bb   : > { %v1276_v13 = vrot.slane %v1629_v8, 1  ;;  %v1668_v53 = vld [vmem:[%s2467_s19 + $0x8] sm:$0xff]  }
 0x1bc   : > { %v938_v59 = vor.u32 %v936_v57, %v935_v56  ;;  %v1663_v57 = vunpack.c.h.bf16 %v1661_v47 }
 0x1be   : > { %v960_v61 = vld [vmem:[#allocation3 + $0x8] sm:$0x3]  ;;  %v939_v62 = vsel %vm2503_vm15, %v931_v58, %v938_v59  ;;  %v1666_v59 = vunpack.c.l.bf16 %v1668_v53 }
 0x1bf   : > { %v961_v3 = vsel %vm2490_vm10, 0, %v960_v61  ;;  %v952_v63 = vsel %vm2551_vm5, %v939_v62, %v951_v60  ;;  %v963_v1 = vld [vmem:[#allocation3] sm:$0xf]  ;;  %v1667_v60 = vunpack.c.h.bf16 %v1668_v53 }
 0x1c0   : > { %962 = vst [vmem:[#allocation3 + $0x8] sm:$0x3] %v961_v3  ;;  %953 = vst [vmem:[#allocation3 + $0x10] sm:$0x3] %v952_v63  ;;  %v1609_v5 = vcombine.low %v963_v1, %v964_v2  ;;  %v1434_v2 = vrot.slane %v1666_v59, 6 }
 0x1c2   : > { %v1018_v6 = vshll.u32 %v1609_v5, 16  ;;  %v1016_v4 = vshrl.u32 %v1609_v5, 16 }
 0x1c4   : > { %v1020_v11 = vrot.slane %v1018_v6, 1 }
 0x1c6   : > { %v1021_v14 = vor.u32 %v1020_v11, %v1016_v4 }
 0x1c7   : > { %v957_v9 = vld [vmem:[#allocation3 + $0x10] sm:$0x2]  ;;  %v2062_v10 = vld [vmem:[#allocation3 + $0x8] sm:$0xff]   ;;  %v2648_v38 = vld [vmem:[#allocation3 + $0x10] ss:$0 sps:$4 sm:$0x33]  }
 0x1c8   : > { %v958_v15 = vsel %vm2530_vm4, 0, %v957_v9  ;;  %v1023_v12 = vshll.u32 %v2062_v10, 16  ;;  %v1277_v55 = vrot.slane %v2062_v10, 1  ;;  %v1027_v22 = vshrl.u32 %v2062_v10, 16 }
 0x1c9   : > { %959 = vst [vmem:[#allocation3 + $0x10] sm:$0x2] %v958_v15  ;;  %v1031_v23 = vshll.u32 %v2648_v38, 16  ;;  %v1279_v24 = vrot.slane %v2648_v38, 1  ;;  %v1035_v32 = vshrl.u32 %v2648_v38, 16 }
 0x1ca   : > { %v1025_v16 = vrot.slane %v1023_v12, 1  ;;  %v2642_v18 = vsel %vm734_vm9, %v1276_v13, %v1277_v55  ;;  %v2076_v42 = vld [vmem:[#allocation3 + $0x10] ss:$0 sps:$4 sm:$0x11]  }
 0x1cb   : > { %v1033_v27 = vrot.slane %v1031_v23, 1  ;;  %v1280_v28 = vsel %vm734_vm9, %v1277_v55, %v1279_v24 }
 0x1cc   : > { %v1026_v19 = vsel %vm472_vm7, %v1021_v14, %v1025_v16  ;;  %v1029_v26 = vor.u32 %v1027_v22, %v1025_v16 }
 0x1cd   : > { %1836 = vmatmul.mubr.bf16.vlgmr.msra.gmra.mrb[0].mxu1 %v1026_v19  ;;  %v1037_v33 = vor.u32 %v1035_v32, %v1033_v27 }
 0x1ce   : > { %1848 = vmatpush3.bf16.msra.mxu1 %v2063_v17  ;;  %1839 = vmatprep.mubr.msk.bf16.mxu1 %vm2246_vm0, %v2245_v0  ;;  %v1034_v29 = vsel %vm472_vm7, %v1029_v26, %v1033_v27 }
 0x1cf   : > { %1849 = vmatprep.subr.bf16.mxu1 %v2245_v0 }
 0x1d2   : > { %1850 = vmatpush3.bf16.msra.mxu1 %v2064_v20 }
 0x1d3   : > { %1851 = vmatprep.subr.bf16.mxu1 %v2245_v0 }
 0x1d5   : > { %1840 = vmatmul.mubr.bf16.gmra.mrb[4].mxu1 %v1034_v29 }
 0x1d6   : > { %1852 = vmatpush3.bf16.msra.mxu1 %v2065_v25  ;;  %1843 = vmatprep.mubr.msk.bf16.mxu1 %vm2246_vm0, %v2245_v0 }
 0x1d7   : > { %1853 = vmatprep.subr.bf16.mxu1 %v2245_v0 }
 0x1da   : > { %1854 = vmatpush3.bf16.msra.mxu1 %v2067_v30 }
 0x1db   : > { %1855 = vmatprep.subr.bf16.mxu1 %v2245_v0 }
 0x1dd   : > { %1844 = vmatmul.mubr.bf16.gmra.mrb[8].mxu1 %v1037_v33 }
 0x1de   : > { %1856 = vmatpush3.bf16.msra.mxu1 %v2068_v31  ;;  %1863 = vmatprep.mubr.msk.bf16.mxu1 %vm2246_vm0, %v2245_v0 }
 0x1df   : > { %1857 = vmatprep.subr.bf16.mxu1 %v2245_v0 }
 0x1e2   : > { %1858 = vmatpush3.bf16.msra.mxu1 %v2069_v34 }
 0x1e3   : > { %1859 = vmatprep.subr.bf16.mxu1 %v2245_v0 }
 0x1e6   : > { %1860 = vmatpush3.bf16.msra.mxu1 %v2070_v35 }
 0x1e7   : > { %1861 = vmatprep.subr.bf16.mxu1 %v2245_v0 }
 0x1ea   : > { %1862 = vmatpush3.bf16.msra.mxu1 %v2071_v36 }
 0x1eb   : > { %1875 = vmatprep.subr.bf16.mxu1 %v2245_v0 }
 0x1ed   : > { %1864 = vmatmul.mubr.bf16.vlgmr.msra.gmra.mrb[0].mxu1 %v1609_v5  ;;  %v1435_v5 = vrot.slane %v1667_v60, 6 }
 0x1ee   : > { %1876 = vmatpush3.bf16.msra.mxu1 %v2072_v37  ;;  %1867 = vmatprep.mubr.msk.bf16.mxu1 %vm2246_vm0, %v2245_v0 }
 0x1ef   : > { %1877 = vmatprep.subr.bf16.mxu1 %v2245_v0  ;;  %v1436_v4 = vsel %vm342_vm6, %v1434_v2, %v1435_v5 }
 0x1f2   : > { %1878 = vmatpush3.bf16.msra.mxu1 %v2073_v39 }
 0x1f3   : > { %1879 = vmatprep.subr.bf16.mxu1 %v2245_v0 }
 0x1f5   : > { %1868 = vmatmul.mubr.bf16.gmra.mrb[4].mxu1 %v2062_v10 }
 0x1f6   : > { %1880 = vmatpush3.bf16.msra.mxu1 %v2074_v40  ;;  %1871 = vmatprep.mubr.msk.bf16.mxu1 %vm2246_vm0, %v2245_v0 }
 0x1f7   : > { %1881 = vmatprep.subr.bf16.mxu1 %v2245_v0 }
 0x1fa   : > { %1882 = vmatpush3.bf16.msra.mxu1 %v2075_v41 }
 0x1fb   : > { %1883 = vmatprep.subr.bf16.mxu1 %v2245_v0 }
 0x1fd   : > { %1872 = vmatmul.mubr.bf16.gmra.mrb[8].mxu1 %v2076_v42 }
 0x1fe   : > { %1884 = vmatpush3.bf16.msra.mxu1 %v2077_v21  ;;  %1891 = vmatprep.mubr.msk.bf16.mxu1 %vm2246_vm0, %v2245_v0 }
 0x1ff   : > { %1885 = vmatprep.subr.bf16.mxu1 %v2245_v0 }
 0x202   : > { %1886 = vmatpush3.bf16.msra.mxu1 %v2078_v43 }
 0x203   : > { %1887 = vmatprep.subr.bf16.mxu1 %v2245_v0 }
 0x206   : > { %1888 = vmatpush3.bf16.msra.mxu1 %v2079_v44 }
 0x207   : > { %1889 = vmatprep.subr.bf16.mxu1 %v2245_v0 }
 0x20a   : > { %1890 = vmatpush3.bf16.msra.mxu1 %v2080_v45 }
 0x20d   : > { %1892 = vmatmul.mubr.bf16.vlgmr.msra.gmra.mrb[0].mxu1 %v2642_v18 }
 0x20e   : > { %1895 = vmatprep.mubr.msk.bf16.mxu1 %vm2246_vm0, %v2245_v0 }
 0x215   : > { %1896 = vmatmul.mubr.bf16.gmra.mrb[4].mxu1 %v1280_v28 }
 0x216   : > { %1899 = vmatprep.mubr.msk.bf16.mxu1 %vm2246_vm0, %v2245_v0 }
 0x21d   : > { %1900 = vmatmul.mubr.bf16.gmra.mrb[8].mxu1 %v1279_v24 }
 0x2e0   : > { %v1366_v48 = vpop.f32.mrb[0].mxu1 }
 0x2e1   : > { %v1400_v50 = vmul.f32 %v1638_v46, %v1366_v48  ;;  %v1893_v52 = vpop.f32.mrb[1].mxu1 }
 0x2e2   : > { %v1369_v54 = vpop.f32.mrb[2].mxu1 }
 0x2e3   : > { %v1412_v0 = vadd.f32 %v1639_v49, %v1400_v50  ;;  %v1401_v56 = vmul.f32 %v1638_v46, %v1369_v54  ;;  %v1894_v58 = vpop.f32.mrb[3].mxu1 }
 0x2e5   : > { %v1421_v61 = vadd.f32 %v1662_v51, %v1412_v0  ;;  %v1413_v62 = vadd.f32 %v1639_v49, %v1401_v56 }
 0x2e7   : > { %v1423_v3 = vmax.f32 %v1421_v61, 0.0  ;;  %v1422_v63 = vadd.f32 %v1663_v57, %v1413_v62 }
 0x2e8   : > { %v1374_v1 = vpop.f32.mrb[4].mxu1 }
 0x2e9   : > { %1425 = vst [vmem:[%s2697_s23] sm:$0xff] %v1423_v3  ;;  %v1424_v6 = vmax.f32 %v1422_v63, 0.0  ;;  %v1402_v7 = vmul.f32 %v1638_v46, %v1374_v1  ;;  %v1897_v8 = vpop.f32.mrb[5].mxu1 }
 0x2ea   : > { %v1377_v9 = vpop.f32.mrb[6].mxu1 }
 0x2eb   : > { %1426 = vst [vmem:[%s2697_s23 + $0x8] sm:$0xff] %v1424_v6  ;;  %v1414_v10 = vadd.f32 %v1639_v49, %v1402_v7  ;;  %v1403_v11 = vmul.f32 %v1638_v46, %v1377_v9  ;;  %v1898_v15 = vpop.f32.mrb[7].mxu1 }
 0x2ed   : > { %v1440_v12 = vadd.f32 %v1434_v2, %v1414_v10  ;;  %v1415_v13 = vadd.f32 %v1639_v49, %v1403_v11 }
 0x2ef   : > { %v1443_v55 = vmax.f32 %v1440_v12, 0.0  ;;  %v1441_v14 = vadd.f32 %v1436_v4, %v1415_v13 }
 0x2f0   : > { %v1382_v16 = vpop.f32.mrb[8].mxu1 }
 0x2f1   : > { %1642 = vst [vmem:[%s2697_s23 + $0xe] sm:$0xfc] %v1443_v55  ;;  %v1444_v17 = vmax.f32 %v1441_v14, 0.0  ;;  %v1404_v18 = vmul.f32 %v1638_v46, %v1382_v16  ;;  %v1901_v19 = vpop.f32.mrb[9].mxu1 }
 0x2f2   : > { %v1385_v20 = vpop.f32.mrb[10].mxu1 }
 0x2f3   : > { %1643 = vst [vmem:[%s2697_s23 + $0x16] sm:$0xff] %v1444_v17  ;;  %v1416_v38 = vadd.f32 %v1639_v49, %v1404_v18  ;;  %v1902_v22 = vpop.f32.mrb[11].mxu1 }
 0x2f5   : > { %v1442_v23 = vadd.f32 %v1435_v5, %v1416_v38 }
 0x2f7   : > { %v1445_v24 = vmax.f32 %v1442_v23, 0.0 }
 0x2f9   : > { %1644 = vst [vmem:[%s2697_s23 + $0x1e] sm:$0x3] %v1445_v24 }
 0x2fa   : > { %2181 = shalt.err (!%p2178_p7)
}
 0x2fb   : > { %s2182_s15 = scalar_lea.hbm %s2711_s9, 512  ;;  %s2186_s23 = scalar_lea.hbm %s2762_s7, 3072 }
 0x2fc   : > { %p2183_p9 = scmp.ne.s32.totalorder %s2711_s9, %s2182_s15  ;;  %p2187_p5 = scmp.lt.u32.totalorder %s2711_s9, %s2762_s7 }
 0x2fd   : > { %p2188_p10 = scmp.lt.u32.totalorder %s2186_s23, %s2182_s15  ;;  %p2190_p2 = scmp.lt.u32.totalorder %s2182_s15, %s2711_s9 }
 0x2fe   : > { %p2184_p12 = pnand %p2183_p9, %p2408_p6 }
 0x2ff   : > { %p2189_p1 = por %p2188_p10, %p2187_p5 }
 0x300   : > { %p2185_p0 = pneg %p2184_p12 }
 0x301   : > { %p2191_p4 = por %p2190_p2, %p2189_p1 }
 0x303   : > { %p2192_p8 = pnand %p2191_p4, %p2185_p0 }
 0x305   : > { %2195 = shalt.err (!%p2192_p8)
}
 0x306   : > { %s2248_s30 = smov 128   ;;  %s2249_s11 = smov 8  }
 0x307   : > { %1961 = dma.vmem_to_hbm [thread:$0]  (%p2408_p6), %s2706_s22, 512, %s2711_s9, %s1451_s29, %s2248_s30, %s2248_s30, %s2249_s11  }
 0x308 PF: > { %p1983_p11 = scmp.ge.s32.totalorder %s2238_s27, 2  ;;  %s1480_s28 = sand.u32 1, %s2226_s24  }
 0x309   : > { %p2795_p13 = scmp.ne.s32.totalorder %s2768_s8, 0  ;;  %s1481_s10 = scalar_lea.sflag [#allocation6], %s1480_s28 }
 0x30b   : > { %p1975_p3 = pnand %p1983_p11, %p2795_p13 }
 0x30d   : > { %2221 = dma.done.wait (!%p1975_p3), %s1481_s10, 512  }
 0x30e   : > { %2223 = vsyncadd (!%p1975_p3), %s1481_s10, 4294966784  ;;  %p21_p7 = scmp.ge.s32.totalorder %s2398_s12, 8   ;;  %s2796_s24 = smov %s2230_s25 }
 0x30f   : > { %s2797_s25 = smov %s2234_s26  ;;  %s2798_s26 = smov %s2414_s17 }
 0x310   : > { %s2799_s27 = smov %s2398_s12  ;;  %23 = sbr.rel (!%p21_p7) target bundleno = 6 (0x6), region = 107 }
 0x317   :  { %1486 = vsyncpa [#allocation5], 1 }
 0x318   :  { %1488 = vsyncpa [#allocation5 + $0x1], 1 }
 0x319   :  { %1489 = vsyncpa [#allocation8], 1 }
 0x31a   :  { %1490 = vsyncpa [#allocation6], 1 }
 0x31b   :  { %1492 = vsyncpa [#allocation6 + $0x1], 1 }

</bundles_post_ra>
